<compile_context>
chip_gen: v7x
topology: tpu7x:2x2x1
jax: 0.10.0
libtpu: 0.0.40
codegen_flags: <defaults>
</compile_context>

<pallas_src>
import functools

import jax
import jax.numpy as jnp
from jax.experimental import pallas as pl
from jax.experimental.pallas import tpu as pltpu

_MIB = 1024 * 1024
# HBM-BW-bound: ~2-4 MiB per pipeline buffer already reaches ~85% of the HBM
# roofline; larger blocks buy no bandwidth and inflate VMEM/vreg pressure.
_TARGET_BLOCK_BYTES = 3 * _MIB
# Keep several grid steps so each v7x TensorCore gets >= 2-4 blocks
# (restores per-core DMA/compute overlap and balances the two TCs).
_MIN_GRID_STEPS = 8


def _rmsnorm_kernel(x_ref, w_ref, o_ref, *, inv_dim: float, eps: float):
    # x_ref: (tile_rows, dim) block; w_ref: (1, dim); o_ref: (tile_rows, dim)
    x = x_ref[...].astype(jnp.float32)
    # mean-of-squares as sum * (1/dim) (1/dim folded as a Python constant):
    # the cross-lane sum runs on the XLU and rsqrt on the EUP, so the VPU only
    # does x*x and the final scale/multiply — all hidden under the HBM DMAs.
    ms = jnp.sum(x * x, axis=-1, keepdims=True) * inv_dim
    y = x * jax.lax.rsqrt(ms + eps)
    w = w_ref[...]  # (1, dim) broadcasts over rows
    # matches torch: y.type_as(weight) * weight (casts are no-ops when f32).
    o_ref[...] = (y.astype(w.dtype) * w).astype(o_ref.dtype)


def _round_up(x: int, m: int) -> int:
    return ((x + m - 1) // m) * m


def _vmem_capacity_bytes() -> int:
    try:
        return int(pltpu.get_tpu_info().vmem_capacity_bytes)
    except Exception:
        # Conservative fallback: v7x has the smallest per-TC VMEM (64 MiB).
        return 64 * _MIB


def _pick_tile_rows(rows: int, dim: int, x_dtype, out_dtype) -> int:
    x_bytes = jnp.dtype(x_dtype).itemsize
    o_bytes = jnp.dtype(out_dtype).itemsize
    # Sub-32-bit dtypes pack rows along sublanes: 8 for f32, 16 bf16, 32 int8.
    align = max(8, 32 // min(x_bytes, o_bytes))
    # Largest per-element footprint of any single live buffer: input block,
    # output block, or the in-kernel f32 upcast temporary (always 4 B/elem).
    widest = max(x_bytes, o_bytes, 4)
    tile = max(align, (_TARGET_BLOCK_BYTES // (dim * widest)) // align * align)
    # Never allocate a block (much) bigger than the row count.
    tile = min(tile, _round_up(rows, align))
    # Keep >= _MIN_GRID_STEPS grid steps when rows allow: ~0.35 us/step cost,
    # but gives each v7x core multiple blocks to pipeline and load-balance.
    if rows > _MIN_GRID_STEPS * align:
        tile = min(tile, _round_up(pl.cdiv(rows, _MIN_GRID_STEPS), align))
    return max(tile, align)


def rmsnorm(x: jax.Array, weight: jax.Array, eps: float = 1e-6,
            tile_rows: int | None = None) -> jax.Array:
    """RMSNorm over the last axis of x. Output dtype == weight.dtype."""
    orig_shape = x.shape
    dim = orig_shape[-1]
    assert weight.shape == (dim,), "weight must have shape (dim,)"

    x2d = x.reshape(-1, dim)
    rows = x2d.shape[0]
    out_dtype = weight.dtype

    # Lane-align the reduction axis so the output stays lane-dense (unmasked
    # vst). Padded lanes are zero in x (no effect on sum-of-squares, since we
    # multiply by 1/dim of the *original* dim) and zero in weight (so the
    # padded output lanes are zero and sliced off below).
    dim_p = _round_up(dim, 128)
    if dim_p != dim:
        pad = dim_p - dim
        x2d = jnp.pad(x2d, ((0, 0), (0, pad)))
        w2d = jnp.pad(weight, (0, pad)).reshape(1, dim_p)
    else:
        w2d = weight.reshape(1, dim_p)

    if tile_rows is None:
        tile_rows = _pick_tile_rows(rows, dim_p, x2d.dtype, out_dtype)

    grid = (pl.cdiv(rows, tile_rows),)  # ragged last block clipped by Pallas

    # VMEM accounting: double-buffered x/out pipeline blocks, the in-kernel
    # f32 temporaries (x_f32 and y, ~one block each), and the resident weight.
    x_bytes = jnp.dtype(x2d.dtype).itemsize
    o_bytes = jnp.dtype(out_dtype).itemsize
    blk_elems = tile_rows * dim_p
    vmem_used = (2 * blk_elems * (x_bytes + o_bytes)   # x/out double buffers
                 + 2 * blk_elems * 4                    # f32 upcast temps
                 + 2 * dim_p * o_bytes)                 # resident weight
    vmem = _vmem_capacity_bytes()
    # >= 16 MiB headroom below physical VMEM (v7x only has 64 MiB per TC).
    vmem_limit = int(min(vmem - 16 * _MIB,
                         max(32 * _MIB, vmem_used + 16 * _MIB)))

    kernel = functools.partial(_rmsnorm_kernel, inv_dim=1.0 / dim, eps=eps)

    # NOTE: default double buffering is kept; at 2-4 MiB blocks the per-step
    # DMA issue latency is fully hidden. (Sweep pl.Buffered(3) only if blocks
    # ever drop below ~1 MiB on v7x.)
    out = pl.pallas_call(
        kernel,
        out_shape=jax.ShapeDtypeStruct((rows, dim_p), out_dtype),
        grid_spec=pltpu.PrefetchScalarGridSpec(
            num_scalar_prefetch=0,
            grid=grid,
            in_specs=[
                pl.BlockSpec((tile_rows, dim_p), lambda i: (i, 0)),
                # Constant index_map: weight DMA'd once, stays VMEM-resident.
                pl.BlockSpec((1, dim_p), lambda i: (0, 0)),
            ],
            out_specs=pl.BlockSpec((tile_rows, dim_p), lambda i: (i, 0)),
        ),
        compiler_params=pltpu.CompilerParams(
            dimension_semantics=("parallel",),  # shards rows across v7x TCs
            vmem_limit_bytes=vmem_limit,
        ),
    )(x2d, w2d)

    if dim_p != dim:
        out = out[:, :dim]
    return out.reshape(orig_shape[:-1] + (dim,))


def rmsnorm_reference(x, weight, eps=1e-6):
    xf = x.astype(jnp.float32)
    y = xf * jax.lax.rsqrt(jnp.mean(xf * xf, axis=-1, keepdims=True) + eps)
    return y.astype(weight.dtype) * weight


if __name__ == "__main__":
    key = jax.random.PRNGKey(0)
    k1, k2, k3 = jax.random.split(key, 3)

    # Primary case: small shapes consistent with the module.
    batch, seq, dim = 2, 8, 128
    x = jax.random.normal(k1, (batch, seq, dim), dtype=jnp.float32)
    weight = jnp.ones((dim,), dtype=jnp.float32)  # nn.Parameter(torch.ones(dim))

    out = jax.block_until_ready(rmsnorm(x, weight, eps=1e-6))
    ref = rmsnorm_reference(x, weight, eps=1e-6)
    assert out.shape == ref.shape and out.dtype == ref.dtype
    assert jnp.allclose(out, ref, atol=1e-5, rtol=1e-5), "mismatch vs reference"

    # Ragged-row / bf16-input case (partial last block; exercises the
    # no-row-padding path and sub-32-bit row alignment handling).
    x_bf16 = jax.random.normal(k2, (15, 256), dtype=jnp.bfloat16)
    w2 = jnp.ones((256,), dtype=jnp.float32)
    out2 = jax.block_until_ready(rmsnorm(x_bf16, w2, eps=1e-6, tile_rows=8))
    ref2 = rmsnorm_reference(x_bf16, w2, eps=1e-6)
    assert out2.shape == ref2.shape and out2.dtype == ref2.dtype
    assert jnp.allclose(out2, ref2, atol=1e-4, rtol=1e-4), "ragged mismatch"

    # Non-lane-aligned dim (exercises the lane-padding wrapper path).
    x3 = jax.random.normal(k3, (4, 96), dtype=jnp.float32)
    w3 = jnp.ones((96,), dtype=jnp.float32)
    out3 = jax.block_until_ready(rmsnorm(x3, w3, eps=1e-6))
    ref3 = rmsnorm_reference(x3, w3, eps=1e-6)
    assert out3.shape == ref3.shape and out3.dtype == ref3.dtype
    assert jnp.allclose(out3, ref3, atol=1e-5, rtol=1e-5), "padded-dim mismatch"

    print("KERNEL_OK")
</pallas_src>

<mosaic_0001>
module attributes {stable_mosaic.version = 11 : i64} {
  func.func @_rmsnorm_kernel(%arg0: i32, %arg1: memref<16x128xf32, #tpu.memory_space<vmem>>, %arg2: memref<1x128xf32, #tpu.memory_space<vmem>>, %arg3: memref<16x128xf32, #tpu.memory_space<vmem>>) attributes {dimension_semantics = [#tpu.dimension_semantics<parallel>], iteration_bounds = array<i64: 1>, scalar_prefetch = 0 : i64, scratch_operands = 0 : i64, tpu.core_type = #tpu.core_type<tc>, window_params = [{transform_indices = @transform_0, window_bounds = array<i64: 16, 128>}, {pipeline_mode = #tpu.pipeline_mode<synchronous>, transform_indices = @transform_1, window_bounds = array<i64: 1, 128>}, {transform_indices = @transform_2, window_bounds = array<i64: 16, 128>}]} {
    %c0 = arith.constant 0 : index
    %c0_0 = arith.constant 0 : index
    %0 = vector.load %arg1[%c0, %c0_0] : memref<16x128xf32, #tpu.memory_space<vmem>>, vector<16x128xf32>
    %1 = arith.mulf %0, %0 : vector<16x128xf32>
    %cst = arith.constant dense<0.000000e+00> : vector<16xf32>
    %2 = vector.multi_reduction <add>, %1, %cst [1] : vector<16x128xf32> to vector<16xf32>
    %3 = vector.shape_cast %2 : vector<16xf32> to vector<16x1xf32>
    %cst_1 = arith.constant 7.812500e-03 : f32
    %4 = vector.broadcast %cst_1 : f32 to vector<16x1xf32>
    %5 = arith.mulf %3, %4 : vector<16x1xf32>
    %cst_2 = arith.constant 9.99999997E-7 : f32
    %6 = vector.broadcast %cst_2 : f32 to vector<16x1xf32>
    %7 = arith.addf %5, %6 : vector<16x1xf32>
    %8 = math.rsqrt %7 : vector<16x1xf32>
    %9 = vector.broadcast %8 : vector<16x1xf32> to vector<16x128xf32>
    %10 = arith.mulf %0, %9 : vector<16x128xf32>
    %c0_3 = arith.constant 0 : index
    %c0_4 = arith.constant 0 : index
    %11 = vector.load %arg2[%c0_3, %c0_4] : memref<1x128xf32, #tpu.memory_space<vmem>>, vector<1x128xf32>
    %12 = vector.broadcast %11 : vector<1x128xf32> to vector<16x128xf32>
    %13 = arith.mulf %10, %12 : vector<16x128xf32>
    %c0_5 = arith.constant 0 : index
    %c0_6 = arith.constant 0 : index
    %14 = vector.load %arg3[%c0_5, %c0_6] : memref<16x128xf32, #tpu.memory_space<vmem>>, vector<16x128xf32>
    tpu.vector_store %arg3[%c0_5, %c0_6], %13 {strides = array<i32>} : memref<16x128xf32, #tpu.memory_space<vmem>>, vector<16x128xf32>,
    return
  }
  func.func @transform_0(%arg0: i32) -> (i32, i32) {
    %c0_i32 = arith.constant 0 : i32
    %c0_i32_0 = arith.constant 0 : i32
    return %arg0, %c0_i32 : i32, i32
  }
  func.func @transform_1(%arg0: i32) -> (i32, i32) {
    %c0_i32 = arith.constant 0 : i32
    %c0_i32_0 = arith.constant 0 : i32
    %c0_i32_1 = arith.constant 0 : i32
    return %c0_i32, %c0_i32_0 : i32, i32
  }
  func.func @transform_2(%arg0: i32) -> (i32, i32) {
    %c0_i32 = arith.constant 0 : i32
    %c0_i32_0 = arith.constant 0 : i32
    return %arg0, %c0_i32 : i32, i32
  }
}

</mosaic_0001>

<bundles_post_ra>
// kernel: tpu_custom_call.1
= control target key start
LH: loop header
LB: loop body
LE: loop exit
PB: predicated region body
PF: predicated region fallthrough
CT: control target
= control target key end

     0   :  { %7 = vsyncpa [#allocation3], 0  ;;  %s179_s0 = inlined_call_operand.hbm [shape: f32[16,128], index: 0, kind: input, shape index: {}]   ;;  %s180_s1 = inlined_call_operand.vmem [shape: f32[1,128], index: 1, kind: input, shape index: {}]   ;;  %s181_s2 = inlined_call_operand.hbm [shape: f32[16,128], index: 2, kind: output, shape index: {}]  }
   0x1   :  { %8 = vsyncpa [#allocation4], 0  ;;  %s127_s9 = smov [#allocation2]   ;;  %s79_s13 = scalar_lea.hbm %s179_s0, 256 }
   0x2   :  { %s14_s10 = sshll.u32 %s127_s9, 4  ;;  %p80_p0 = scmp.ne.s32.totalorder %s179_s0, %s79_s13  ;;  %s15_s10 = int_to_ptr.vmem [resolvable:$true] %s14_s10 }
   0x3   :  { %p83_p1 = scmp.lt.u32.totalorder %s79_s13, %s179_s0 }
   0x5   :  { %p85_p2 = pnand %p83_p1, %p80_p0 }
   0x7   :  { %88 = shalt.err (!%p85_p2)
}
   0x8   :  { %s89_s18 = scalar_lea.vmem %s15_s10, 256  ;;  %p94_p4 = scmp.lt.s32.totalorder %s15_s10, %s15_s10 }
   0x9   :  { %p90_p3 = scmp.ne.s32.totalorder %s15_s10, %s89_s18  ;;  %p95_p5 = scmp.lt.s32.totalorder %s89_s18, %s89_s18 }
   0xb   :  { %p96_p6 = por %p95_p5, %p94_p4 }
   0xd   :  { %p97_p7 = pnand %p96_p6, %p90_p3 }
   0xf   :  { %100 = shalt.err (!%p97_p7)
}
  0x10   :  { %s128_s19 = smov 128   ;;  %s129_s20 = smov 8  }
  0x11   :  { %20 = dma.hbm_to_vmem [thread:$0]  %s179_s0, 256, %s15_s10, [#allocation3], %s128_s19, %s128_s19, %s129_s20  }
  0x12   :  { %123 = dma.done.wait [#allocation3], 256  }
  0x13   :  { %124 = vsyncadd [#allocation3], 4294967040  ;;  %v26_v0 = vld [vmem:[#allocation2] sm:$0xff]  ;;  %v27_v1 = vld [vmem:[#allocation2 + $0x8] sm:$0xff]  ;;  %s130_s0 = smov [#allocation5]  }
  0x14   :  { %v28_v2 = vmul.f32 %v26_v0, %v26_v0  ;;  %v29_v3 = vmul.f32 %v27_v1, %v27_v1  ;;  %v70_v11 = vld [vmem:[%s180_s1] ss:$0 sm:$0xff]  ;;  %s58_s25 = sshll.u32 %s130_s0, 4  ;;  %s59_s25 = int_to_ptr.vmem [resolvable:$true] %s58_s25 }
  0x15   :  { %s101_s26 = scalar_lea.vmem %s59_s25, 256  ;;  %p106_p9 = scmp.lt.s32.totalorder %s59_s25, %s59_s25 }
  0x16   :  { %30 = vadd.xlane.f32.xlu0 %v28_v2  ;;  %p102_p8 = scmp.ne.s32.totalorder %s59_s25, %s101_s26  ;;  %p107_p10 = scmp.lt.s32.totalorder %s101_s26, %s101_s26 }
  0x18   :  { %p108_p11 = por %p107_p10, %p106_p9 }
  0x1a   :  { %32 = vadd.xlane.f32.xlu0 %v29_v3  ;;  %p109_p12 = pnand %p108_p11, %p102_p8 }
  0xa3   :  { %v31_v4 = vpop.xlane.xlu0 %30 }
  0xa4   :  { %v34_v5 = vmul.f32 0.0078125, %v31_v4 }
  0xa6   :  { %v36_v6 = vadd.f32 1e-06, %v34_v5 }
  0xa7   :  { %v33_v7 = vpop.xlane.xlu0 %32 }
  0xa8   :  { %75 = vrsqrt.f32 %v36_v6  ;;  %v35_v8 = vmul.f32 0.0078125, %v33_v7 }
  0xaa   :  { %v37_v9 = vadd.f32 1e-06, %v35_v8 }
  0xac   :  { %77 = vrsqrt.f32 %v37_v9 }
  0xb2   :  { %v76_v10 = vpop.eup %75 }
  0xb3   :  { %v40_v12 = vmul.f32 %v76_v10, %v26_v0 }
  0xb5   :  { %v49_v13 = vmul.f32 %v70_v11, %v40_v12 }
  0xb6   :  { %v78_v14 = vpop.eup %77 }
  0xb7   :  { %v41_v15 = vmul.f32 %v78_v14, %v27_v1  ;;  %51 = vst [vmem:[#allocation5] sm:$0xff] %v49_v13 }
  0xb9   :  { %v50_v16 = vmul.f32 %v70_v11, %v41_v15 }
  0xbb   :  { %52 = vst [vmem:[#allocation5 + $0x8] sm:$0xff] %v50_v16 }
  0xbc   :  { %112 = shalt.err (!%p109_p12)
}
  0xbd   :  { %s113_s1 = scalar_lea.hbm %s181_s2, 256 }
  0xbe   :  { %p114_p13 = scmp.ne.s32.totalorder %s181_s2, %s113_s1  ;;  %p117_p0 = scmp.lt.u32.totalorder %s113_s1, %s181_s2 }
  0xc0   :  { %p119_p1 = pnand %p117_p0, %p114_p13 }
  0xc2   :  { %122 = shalt.err (!%p119_p1)
}
  0xc3   :  { %64 = dma.vmem_to_hbm [thread:$0]  %s59_s25, 256, %s181_s2, [#allocation4], %s128_s19, %s128_s19, %s129_s20  }
  0xc4   :  { %125 = dma.done.wait [#allocation4], 256  }
  0xc5   :  { %126 = vsyncadd [#allocation4], 4294967040 }
  0xc6   :  { %68 = vsyncpa [#allocation3], 1 }
  0xc7   :  { %69 = vsyncpa [#allocation4], 1 }

</bundles_post_ra>
